<compile_context>
chip_gen: v5e
topology: v5e:2x2
jax: 0.10.0
libtpu: 0.0.40
codegen_flags: <defaults>
</compile_context>

<pallas_src>
import functools

import jax
import jax.numpy as jnp
from jax.experimental import pallas as pl
from jax.experimental.pallas import tpu as pltpu

_MAX_TILE_HW = 16384  # ~sweet spot for streaming; far past the 512–2048 BW knee.


def _pwconv_kernel(x_ref, w_ref, b_ref, o_ref, *, use_vpu):
    # x_ref: (C_in, T)  w_ref: (C_out, C_in)  b_ref: (C_out, 1)  o_ref: (C_out, T)
    b = b_ref[...].astype(jnp.float32)
    c_out, c_in = w_ref.shape

    if use_vpu:
        # Tiny contraction (K=C_in): unrolled VPU fmas over the lane-dense HW
        # tile. Bias folded into the final add (no tile-wide broadcast temp).
        x = x_ref[...]
        w = w_ref[...]
        acc = None
        for c in range(c_in):
            term = (w[:, c:c + 1].astype(jnp.float32)
                    * x[c:c + 1, :].astype(jnp.float32))
            acc = term if acc is None else acc + term
        acc = acc + b
    else:
        # Native-dtype operands into the MXU (bf16-in/f32-accum is native on
        # v5e/v6e/v7x); only the bias/accumulator is f32 — no f32 copy of x.
        acc = jnp.dot(w_ref[...], x_ref[...],
                      preferred_element_type=jnp.float32) + b

    o_ref[...] = acc.astype(o_ref.dtype)


@jax.jit
def pwconv(x_nchw, weight, bias):
    """1x1 conv. x_nchw: (N, C_in, H, W); weight: (C_out, C_in, 1, 1); bias: (C_out,)."""
    N, C_in, H, W = x_nchw.shape
    C_out = weight.shape[0]
    HW = H * W
    itemsize = jnp.dtype(x_nchw.dtype).itemsize

    # ---- tile selection (generation-portable, with headroom) ----------------
    try:
        vmem_cap = int(pltpu.get_tpu_info().vmem_capacity_bytes)
    except Exception:  # pragma: no cover - conservative fallback (v7x size)
        vmem_cap = 64 << 20

    hw_ceil128 = pl.cdiv(HW, 128) * 128
    # Per HW element: double-buffered in+out tiles plus the f32 accumulator and
    # slack for Mosaic-internal scratch.
    bytes_per_hw = 2 * (C_in + C_out) * itemsize + (C_in + C_out) * 4
    budget = vmem_cap // 8
    vmem_tile_cap = max(128, (budget // bytes_per_hw) // 128 * 128)
    tile_hw = int(max(128, min(hw_ceil128, _MAX_TILE_HW, vmem_tile_cap)))
    num_tiles = int(pl.cdiv(HW, tile_hw))

    # Guarantee >= 4 total grid steps so v7x's 2 TensorCores both get work.
    while N * num_tiles < 4 and tile_hw > 128:
        tile_hw = max(128, ((tile_hw // 2) // 128) * 128)
        num_tiles = int(pl.cdiv(HW, tile_hw))

    # ---- glue (free reshape only; no pad, no transpose) ---------------------
    x_rows = x_nchw.reshape(N, C_in, HW)
    w_mat = weight.reshape(C_out, C_in)
    b_col = bias.reshape(C_out, 1)

    # Skinny-contraction heuristic: <2% MXU utilization territory -> VPU.
    use_vpu = (C_in <= 32) and (C_in * C_out <= 1024)
    kernel = functools.partial(_pwconv_kernel, use_vpu=use_vpu)

    per_step_io = 2 * (C_in + C_out) * tile_hw * itemsize
    acc_bytes = C_out * tile_hw * 4
    vmem_limit = int(min(vmem_cap // 2,
                         max(32 << 20, 2 * per_step_io + acc_bytes + (4 << 20))))

    cost = pl.CostEstimate(
        flops=2 * N * C_out * C_in * HW,
        transcendentals=0,
        bytes_accessed=(N * C_in * HW + N * C_out * HW) * itemsize
        + (C_out * C_in + C_out) * itemsize,
    )

    out_rows = pl.pallas_call(
        kernel,
        out_shape=jax.ShapeDtypeStruct((N, C_out, HW), x_nchw.dtype),
        grid_spec=pl.GridSpec(
            grid=(N, num_tiles),
            in_specs=[
                pl.BlockSpec((None, C_in, tile_hw), lambda n, t: (n, 0, t)),
                pl.BlockSpec((C_out, C_in), lambda n, t: (0, 0)),
                pl.BlockSpec((C_out, 1), lambda n, t: (0, 0)),
            ],
            out_specs=pl.BlockSpec((None, C_out, tile_hw), lambda n, t: (n, 0, t)),
        ),
        compiler_params=pltpu.CompilerParams(
            dimension_semantics=("parallel", "parallel"),
            vmem_limit_bytes=vmem_limit,
        ),
        cost_estimate=cost,
    )(x_rows, w_mat, b_col)

    return out_rows.reshape(N, C_out, H, W)


if __name__ == "__main__":
    # Module config: PWConv(dim_in=4, dim_out=8); input x: (2, 4, 16, 16) NCHW.
    N, C_in, C_out, HWs = 2, 4, 8, 16

    key = jax.random.PRNGKey(0)
    kx, kw, kb = jax.random.split(key, 3)
    x = jax.random.normal(kx, (N, C_in, HWs, HWs), dtype=jnp.float32)
    # Deterministic synthetic params (shapes from nn.Conv2d(dim_in, dim_out, 1, 1)).
    weight = jax.random.normal(kw, (C_out, C_in, 1, 1), dtype=jnp.float32) * 0.1
    bias = jax.random.normal(kb, (C_out,), dtype=jnp.float32) * 0.1

    out = pwconv(x, weight, bias)
    jax.block_until_ready(out)

    # Reference check (pure JAX einsum == 1x1 conv with bias).
    ref = jnp.einsum("nchw,oc->nohw", x, weight.reshape(C_out, C_in)) \
        + bias.reshape(1, C_out, 1, 1)
    assert out.shape == (N, C_out, HWs, HWs)
    assert jnp.allclose(out, ref, atol=1e-5, rtol=1e-5)

    print("KERNEL_OK")
</pallas_src>

<mosaic_0001>
module attributes {stable_mosaic.version = 11 : i64} {
  func.func @_pwconv_kernel(%arg0: i32, %arg1: i32, %arg2: memref<1x4x128xf32, #tpu.memory_space<vmem>>, %arg3: memref<8x4xf32, #tpu.memory_space<vmem>>, %arg4: memref<8x1xf32, #tpu.memory_space<vmem>>, %arg5: memref<1x8x128xf32, #tpu.memory_space<vmem>>) attributes {dimension_semantics = [#tpu.dimension_semantics<parallel>, #tpu.dimension_semantics<parallel>], iteration_bounds = array<i64: 2, 2>, scalar_prefetch = 0 : i64, scratch_operands = 0 : i64, tpu.core_type = #tpu.core_type<tc>, window_params = [{transform_indices = @transform_0, window_bounds = array<i64: 1, 4, 128>}, {pipeline_mode = #tpu.pipeline_mode<synchronous>, transform_indices = @transform_1, window_bounds = array<i64: 8, 4>}, {pipeline_mode = #tpu.pipeline_mode<synchronous>, transform_indices = @transform_2, window_bounds = array<i64: 8, 1>}, {transform_indices = @transform_3, window_bounds = array<i64: 1, 8, 128>}]} {
    %c0 = arith.constant 0 : index
    %c0_0 = arith.constant 0 : index
    %0 = vector.load %arg4[%c0, %c0_0] : memref<8x1xf32, #tpu.memory_space<vmem>>, vector<8x1xf32>
    %c0_1 = arith.constant 0 : index
    %c0_2 = arith.constant 0 : index
    %c0_3 = arith.constant 0 : index
    %1 = vector.load %arg2[%c0_1, %c0_2, %c0_3] : memref<1x4x128xf32, #tpu.memory_space<vmem>>, vector<1x4x128xf32>
    %2 = vector.shape_cast %1 : vector<1x4x128xf32> to vector<4x128xf32>
    %c0_4 = arith.constant 0 : index
    %c0_5 = arith.constant 0 : index
    %3 = vector.load %arg3[%c0_4, %c0_5] : memref<8x4xf32, #tpu.memory_space<vmem>>, vector<8x4xf32>
    %4 = vector.extract_strided_slice %3 {offsets = [0, 0], sizes = [8, 1], strides = [1, 1]} : vector<8x4xf32> to vector<8x1xf32>
    %5 = vector.extract_strided_slice %2 {offsets = [0, 0], sizes = [1, 128], strides = [1, 1]} : vector<4x128xf32> to vector<1x128xf32>
    %6 = vector.broadcast %4 : vector<8x1xf32> to vector<8x128xf32>
    %7 = vector.broadcast %5 : vector<1x128xf32> to vector<8x128xf32>
    %8 = arith.mulf %6, %7 : vector<8x128xf32>
    %9 = vector.extract_strided_slice %3 {offsets = [0, 1], sizes = [8, 1], strides = [1, 1]} : vector<8x4xf32> to vector<8x1xf32>
    %10 = vector.extract_strided_slice %2 {offsets = [1, 0], sizes = [1, 128], strides = [1, 1]} : vector<4x128xf32> to vector<1x128xf32>
    %11 = vector.broadcast %9 : vector<8x1xf32> to vector<8x128xf32>
    %12 = vector.broadcast %10 : vector<1x128xf32> to vector<8x128xf32>
    %13 = arith.mulf %11, %12 : vector<8x128xf32>
    %14 = arith.addf %8, %13 : vector<8x128xf32>
    %15 = vector.extract_strided_slice %3 {offsets = [0, 2], sizes = [8, 1], strides = [1, 1]} : vector<8x4xf32> to vector<8x1xf32>
    %16 = vector.extract_strided_slice %2 {offsets = [2, 0], sizes = [1, 128], strides = [1, 1]} : vector<4x128xf32> to vector<1x128xf32>
    %17 = vector.broadcast %15 : vector<8x1xf32> to vector<8x128xf32>
    %18 = vector.broadcast %16 : vector<1x128xf32> to vector<8x128xf32>
    %19 = arith.mulf %17, %18 : vector<8x128xf32>
    %20 = arith.addf %14, %19 : vector<8x128xf32>
    %21 = vector.extract_strided_slice %3 {offsets = [0, 3], sizes = [8, 1], strides = [1, 1]} : vector<8x4xf32> to vector<8x1xf32>
    %22 = vector.extract_strided_slice %2 {offsets = [3, 0], sizes = [1, 128], strides = [1, 1]} : vector<4x128xf32> to vector<1x128xf32>
    %23 = vector.broadcast %21 : vector<8x1xf32> to vector<8x128xf32>
    %24 = vector.broadcast %22 : vector<1x128xf32> to vector<8x128xf32>
    %25 = arith.mulf %23, %24 : vector<8x128xf32>
    %26 = arith.addf %20, %25 : vector<8x128xf32>
    %27 = vector.broadcast %0 : vector<8x1xf32> to vector<8x128xf32>
    %28 = arith.addf %26, %27 : vector<8x128xf32>
    %c0_6 = arith.constant 0 : index
    %c0_7 = arith.constant 0 : index
    %c0_8 = arith.constant 0 : index
    %29 = vector.load %arg5[%c0_6, %c0_7, %c0_8] : memref<1x8x128xf32, #tpu.memory_space<vmem>>, vector<1x8x128xf32>
    %30 = vector.shape_cast %29 : vector<1x8x128xf32> to vector<8x128xf32>
    %31 = vector.shape_cast %28 : vector<8x128xf32> to vector<1x8x128xf32>
    tpu.vector_store %arg5[%c0_6, %c0_7, %c0_8], %31 {strides = array<i32>} : memref<1x8x128xf32, #tpu.memory_space<vmem>>, vector<1x8x128xf32>,
    return
  }
  func.func @transform_0(%arg0: i32, %arg1: i32) -> (i32, i32, i32) {
    %c0_i32 = arith.constant 0 : i32
    %c0_i32_0 = arith.constant 0 : i32
    return %arg0, %c0_i32, %arg1 : i32, i32, i32
  }
  func.func @transform_1(%arg0: i32, %arg1: i32) -> (i32, i32) {
    %c0_i32 = arith.constant 0 : i32
    %c0_i32_0 = arith.constant 0 : i32
    %c0_i32_1 = arith.constant 0 : i32
    return %c0_i32, %c0_i32_0 : i32, i32
  }
  func.func @transform_2(%arg0: i32, %arg1: i32) -> (i32, i32) {
    %c0_i32 = arith.constant 0 : i32
    %c0_i32_0 = arith.constant 0 : i32
    %c0_i32_1 = arith.constant 0 : i32
    return %c0_i32, %c0_i32_0 : i32, i32
  }
  func.func @transform_3(%arg0: i32, %arg1: i32) -> (i32, i32, i32) {
    %c0_i32 = arith.constant 0 : i32
    %c0_i32_0 = arith.constant 0 : i32
    return %arg0, %c0_i32, %arg1 : i32, i32, i32
  }
}

</mosaic_0001>

<bundles_post_ra>
// kernel: pwconv.1
= control target key start
LH: loop header
LB: loop body
LE: loop exit
PB: predicated region body
PF: predicated region fallthrough
CT: control target
= control target key end

     0   :  { %s451_s12 = smov 0   ;;  %s453_s13 = smov 0   ;;  %s516_s0 = inlined_call_operand.vmem [shape: f32[2,4,256], index: 0, kind: input, shape index: {}]   ;;  %s517_s1 = inlined_call_operand.vmem [shape: f32[8,4], index: 1, kind: input, shape index: {}]   ;;  %s518_s2 = inlined_call_operand.vmem [shape: f32[8,1], index: 2, kind: input, shape index: {}]   ;;  %s519_s3 = inlined_call_operand.vmem [shape: f32[2,8,256], index: 3, kind: output, shape index: {}]  }
   0x1   :  { %s455_s14 = smov 0   ;;  %s457_s15 = smov 0  }
   0x2   :  { %s459_s16 = smov 0  }
   0x3 LB: > { %s22_s17 = sadd.s32 1, %s417_s14  ;;  %s25_s18 = sadd.s32 1, %s421_s15  ;;  %s425_s16 = sphi %s459_s16, %s13_s16   ;;  %s421_s15 = sphi %s457_s15, %s523_s15   ;;  %s417_s14 = sphi %s455_s14, %s522_s14   ;;  %s413_s13 = sphi %s453_s13, %s521_s13   ;;  %s409_s12 = sphi %s451_s12, %s520_s12  }
   0x4   : > { %p23_p0 = scmp.ge.s32.totalorder %s22_s17, 2  ;;  %p330_p1 = scmp.ge.s32.totalorder %s425_s16, 1 }
   0x5   : > { %p156_p2 = scmp.lt.s32.totalorder %s425_s16, 5 }
   0x6   : > { %s525_s17 = smov (%p23_p0, %s22_s17), 0  ;;  %s527_s18 = smov (!%p23_p0, %s25_s18), %s421_s15 }
   0x7   : > { %p157_p3 = pnand %p330_p1, %p156_p2  ;;  %p27_p4 = scmp.ge.s32.totalorder %s527_s18, 2 }
   0x8   : > { %p186_p5 = scmp.lt.s32.totalorder (!%p157_p3), %s413_s13, 1  ;;  %p188_p6 = scmp.lt.s32.totalorder (!%p157_p3), %s409_s12, 1 }
   0x9   : > { %s529_s18 = smov (%p27_p4, %s527_s18), 0  ;;  %160 = sbr.rel (%p157_p3) target bundleno = 151 (0x97), region = 32 }
   0xe   : > { %v204_v0 = vld [vmem:[%s517_s1] sm:$0xff]  ;;  %v427_v1 = vmov 0   ;;  %v428_v2 = vmov 2   ;;  %v429_v4 = vmov 1   ;;  %v430_v5 = vmov 3   ;;  %s531_s13 = smov (!%p186_p5, %s413_s13), 1 }
   0xf   : > { %381 = vset.pattern.permute.xlu0 %v427_v1  ;;  %383 = vset.pattern.permute.xlu1 %v428_v2  ;;  %v202_v3 = vld [vmem:[%s518_s2] sm:$0xff]  ;;  %s533_s12 = smov (!%p188_p6, %s409_s12), 1  ;;  %s331_s23 = sshll.u32 %s531_s13, 1 }
  0x10   : > { %207 = vperm.xlu0 %381, %v204_v0   ;;  %220 = vperm.xlu1 %383, %v204_v0   ;;  %s191_s24 = sadd.s32 %s331_s23, %s533_s12 }
  0x11   : > { %385 = vset.pattern.permute.xlu2 %v427_v1  ;;  %s332_s25 = sshll.u32 %s191_s24, 2  ;;  %s334_s29 = sshll.u32 %s191_s24, 3 }
  0x12   : > { %235 = vperm.xlu2 %385, %v202_v3   ;;  %s193_s28 = scalar_lea.vmem %s516_s0, %s332_s25  ;;  %s201_s5 = scalar_lea.vmem %s519_s3, %s334_s29 }
  0x13   : > { %v203_v8 = vld [vmem:[%s193_s28] sm:$0xf] }
  0x14   : > { %v210_v9 = vperm.slane %v203_v8, 0  ;;  %v216_v10 = vperm.slane %v203_v8, 1  ;;  %v223_v11 = vperm.slane %v203_v8, 2  ;;  %v230_v12 = vperm.slane %v203_v8, 3 }
  0x18   : > { %382 = vset.pattern.permute.xlu0 %v429_v4  ;;  %384 = vset.pattern.permute.xlu1 %v430_v5 }
  0x19   : > { %213 = vperm.xlu0 %382, %v204_v0   ;;  %227 = vperm.xlu1 %384, %v204_v0  }
  0x21   : > { %386 = vset.pattern.permute.xlu0 %v427_v1 }
  0x6c   : > { %v236_v21 = vpop.permute.xlu2 %235 }
  0x82   : > { %v208_v6 = vpop.permute.xlu0 %207  ;;  %v221_v7 = vpop.permute.xlu1 %220 }
  0x83   : > { %v211_v15 = vmul.f32 %v210_v9, %v208_v6  ;;  %v224_v17 = vmul.f32 %v223_v11, %v221_v7 }
  0x8b   : > { %v214_v13 = vpop.permute.xlu0 %213  ;;  %v228_v14 = vpop.permute.xlu1 %227 }
  0x8c   : > { %v217_v16 = vmul.f32 %v216_v10, %v214_v13  ;;  %v231_v19 = vmul.f32 %v230_v12, %v228_v14 }
  0x8e   : > { %v218_v18 = vadd.f32 %v217_v16, %v211_v15 }
  0x90   : > { %v225_v20 = vadd.f32 %v224_v17, %v218_v18 }
  0x92   : > { %v232_v22 = vadd.f32 %v231_v19, %v225_v20 }
  0x94   : > { %v238_v23 = vadd.f32 %v236_v21, %v232_v22 }
  0x96   : > { %239 = vst [vmem:[%s201_s5] sm:$0xff] %v238_v23 }
  0x97 PF: > { %s13_s16 = sadd.s32 1, %s425_s16   ;;  %s520_s12 = smov %s417_s14 }
  0x98   : > { %p10_p7 = scmp.ge.s32.totalorder %s13_s16, 6   ;;  %s521_s13 = smov %s421_s15 }
  0x99   : > { %s522_s14 = smov %s525_s17  ;;  %s523_s15 = smov %s529_s18 }
  0x9a   :  { %12 = sbr.rel (!%p10_p7) target bundleno = 3 (0x3), region = 62 }

</bundles_post_ra>
